<compile_context>
chip_gen: v6e
topology: v6e:2x2x1
jax: 0.10.0
libtpu: 0.0.40
codegen_flags: <defaults>
</compile_context>

<pallas_src>
import functools

import jax
import jax.numpy as jnp
from jax.experimental import pallas as pl
from jax.experimental.pallas import tpu as pltpu

LANE = 128


def _tpu_config():
    """Generation-keyed constants: block sizing, VMEM budget, core split."""
    try:
        kind = jax.devices()[0].device_kind.lower()
    except Exception:
        kind = ""
    if "7" in kind:
        # v7x: 2 TensorCores/chip, 64 MiB VMEM, ~3.2 TB/s HBM.
        return dict(target_block_elems=1024 * 1024,      # 4 MiB f32 per block
                    vmem_limit_bytes=48 * 1024 * 1024,
                    n_cores=2,
                    buffers=3)
    # v5e / v6e: 1 TensorCore/chip, 128 MiB VMEM, 0.8-1.4 TB/s HBM.
    return dict(target_block_elems=2 * 1024 * 1024,      # 8 MiB f32 per block
                vmem_limit_bytes=64 * 1024 * 1024,
                n_cores=1,
                buffers=2)


def _bce_kernel(pred_ref, targ_ref, out_ref, acc_ref, *,
                rows, block_rows, width, acc_rows, fold,
                blocks_per_split, num_blocks, has_phantom):
    j = pl.program_id(1)          # sequential row-block (reduction) axis

    @pl.when(j == 0)
    def _init():
        acc_ref[...] = jnp.zeros_like(acc_ref)

    # Position of this block in the flat row-block order.
    logical_block = pl.program_id(0) * blocks_per_split + j

    def block_loss():
        x = pred_ref[...].astype(jnp.float32)
        t = targ_ref[...].astype(jnp.float32)
        # numerically stable BCE-with-logits: max(x,0) - x*t + log1p(exp(-|x|))
        return jnp.maximum(x, 0.0) - x * t + jnp.log1p(jnp.exp(-jnp.abs(x)))

    def fold_add(v):
        # Folded partial sums into a small (acc_rows, width) accumulator.
        # The reshape groups whole 8-row sublane tiles (block_rows is
        # 8/32-aligned whenever fold > 1), so it is layout-free.
        if fold > 1:
            v = v.reshape(fold, acc_rows, width).sum(axis=0)
        acc_ref[...] += v

    # Static (Python int) number of valid rows in the last real block.
    valid_rows_last = rows - (num_blocks - 1) * block_rows

    if valid_rows_last == block_rows:
        # Every real block is fully in-bounds.
        if has_phantom:
            @pl.when(logical_block < num_blocks)
            def _acc():
                fold_add(block_loss())
        else:
            fold_add(block_loss())
    else:
        @pl.when(logical_block < num_blocks - 1)
        def _acc_full():
            fold_add(block_loss())

        # Ragged last block: mask garbage rows (block-local, static count)
        # BEFORE the fold-sum so uninitialized VMEM never reaches the reduce.
        @pl.when(logical_block == num_blocks - 1)
        def _acc_last():
            v = block_loss()
            r = jax.lax.broadcasted_iota(jnp.int32, v.shape, 0)
            fold_add(jnp.where(r < valid_rows_last, v, 0.0))

    @pl.when(j == pl.num_programs(1) - 1)
    def _finalize():
        # Single cross-lane reduce per split.
        out_ref[0, 0] = jnp.sum(acc_ref[...])


def bce_with_logits_loss(predicted, target, *, target_block_elems=None):
    """Mean BCE-with-logits over all elements (matches nn.BCEWithLogitsLoss())."""
    assert predicted.shape == target.shape
    n = predicted.size
    assert n > 0

    cfg = _tpu_config()
    if target_block_elems is None:
        target_block_elems = cfg["target_block_elems"]

    p_flat = predicted.reshape(-1)   # native dtype; cast happens in-kernel
    t_flat = target.reshape(-1)

    # Widest lane-dense width that divides n exactly -> pure (free) reshape.
    width = None
    for w in (8 * LANE, 4 * LANE, 2 * LANE, LANE):
        if n % w == 0:
            width = w
            break
    if width is None:
        width = 8 * LANE

    rows = n // width
    main_n = rows * width
    tail_n = n - main_n

    total = jnp.float32(0.0)
    if tail_n:
        # Tiny (< width elements) ragged tail handled with plain jnp in the
        # wrapper instead of an O(N) padded copy of both inputs.
        xt = p_flat[main_n:].astype(jnp.float32)
        tt = t_flat[main_n:].astype(jnp.float32)
        total = total + jnp.sum(
            jnp.maximum(xt, 0.0) - xt * tt + jnp.log1p(jnp.exp(-jnp.abs(xt))))

    if rows == 0:
        # Input smaller than one lane-dense row: nothing for the kernel to do.
        return total / jnp.float32(n)

    # Common (divisible) case is a zero-copy reshape; ragged n pays one
    # prefix-slice copy of the kernel portion only.
    p2 = (p_flat[:main_n] if tail_n else p_flat).reshape(rows, width)
    t2 = (t_flat[:main_n] if tail_n else t_flat).reshape(rows, width)

    target_rows = max(1, target_block_elems // width)
    if rows <= max(target_rows, 32):
        block_rows = rows                               # full extent: always legal
    else:
        block_rows = max(32, (target_rows // 32) * 32)  # 32-aligned (f32/bf16/int8)

    num_blocks = pl.cdiv(rows, block_rows)
    n_splits = cfg["n_cores"] if num_blocks >= cfg["n_cores"] else 1
    bpc = pl.cdiv(num_blocks, n_splits)                 # row-blocks per split
    has_phantom = (n_splits * bpc) != num_blocks

    # Small folded accumulator: (8, width) whenever block_rows is 8-aligned.
    if block_rows % 8 == 0:
        acc_rows, fold = 8, block_rows // 8
    else:
        acc_rows, fold = block_rows, 1

    def in_index(pidx, jidx):
        blk = pidx * bpc + jidx
        if has_phantom:
            # Keep the phantom trailing block's DMA in bounds; its compute is
            # skipped entirely in-kernel.
            blk = jnp.minimum(blk, num_blocks - 1)
        return (blk, 0)

    # Deeper pipelining only where it pays (v7x fast HBM) and only if the
    # sequential axis is long enough to use it.
    if cfg["buffers"] > 2 and bpc >= cfg["buffers"]:
        in_spec = pl.BlockSpec((block_rows, width), in_index,
                               pipeline_mode=pl.Buffered(cfg["buffers"]))
    else:
        in_spec = pl.BlockSpec((block_rows, width), in_index)

    if n_splits > 1:
        dims = (pltpu.CORE_PARALLEL, pltpu.ARBITRARY)   # real cross-TC split
    else:
        dims = ("arbitrary", "arbitrary")

    kernel = functools.partial(
        _bce_kernel,
        rows=rows, block_rows=block_rows, width=width,
        acc_rows=acc_rows, fold=fold,
        blocks_per_split=bpc, num_blocks=num_blocks, has_phantom=has_phantom)

    cost = pl.CostEstimate(
        flops=6 * main_n,
        transcendentals=2 * main_n,
        bytes_accessed=main_n * (predicted.dtype.itemsize + target.dtype.itemsize)
        + 4 * n_splits,
    )

    partials = pl.pallas_call(
        kernel,
        out_shape=jax.ShapeDtypeStruct((n_splits, 1), jnp.float32),
        grid_spec=pltpu.PrefetchScalarGridSpec(
            num_scalar_prefetch=0,
            grid=(n_splits, bpc),
            in_specs=[in_spec, in_spec],
            out_specs=pl.BlockSpec((1, 1), lambda pidx, jidx: (pidx, 0),
                                   memory_space=pltpu.SMEM),
            scratch_shapes=[pltpu.VMEM((acc_rows, width), jnp.float32)],
        ),
        compiler_params=pltpu.CompilerParams(
            dimension_semantics=dims,
            vmem_limit_bytes=cfg["vmem_limit_bytes"],
        ),
        cost_estimate=cost,
    )(p2, t2)

    total = total + jnp.sum(partials)
    return total / jnp.float32(n)


def _reference(predicted, target):
    x = predicted.astype(jnp.float32)
    t = target.astype(jnp.float32)
    return jnp.mean(jnp.maximum(x, 0.0) - x * t + jnp.log1p(jnp.exp(-jnp.abs(x))))


if __name__ == "__main__":
    key = jax.random.PRNGKey(0)
    ks = jax.random.split(key, 8)

    # Test 1: NCHW-style segmentation logits (the module's typical use).
    shape = (2, 4, 16, 16)
    pred = jax.random.normal(ks[0], shape, dtype=jnp.float32) * 2.0
    targ = (jax.random.uniform(ks[1], shape) > 0.5).astype(jnp.float32)
    loss = jax.block_until_ready(bce_with_logits_loss(pred, targ))
    ref = _reference(pred, targ)
    assert jnp.allclose(loss, ref, rtol=1e-5, atol=1e-6), (loss, ref)

    # Test 2: multi-block grid with a ragged last block (rows % block_rows != 0)
    # -> exercises accumulation, the in-kernel row mask, and (on v7x) the
    # core-parallel split.
    shape2 = (2, 20, 32, 32)   # 40960 elements -> 40 rows of width 1024
    pred2 = jax.random.normal(ks[2], shape2, dtype=jnp.float32) * 1.5
    targ2 = (jax.random.uniform(ks[3], shape2) > 0.5).astype(jnp.float32)
    loss2 = jax.block_until_ready(
        bce_with_logits_loss(pred2, targ2, target_block_elems=8 * 1024))
    ref2 = _reference(pred2, targ2)
    assert jnp.allclose(loss2, ref2, rtol=1e-5, atol=1e-6), (loss2, ref2)

    # Test 3: size not divisible by 128 -> kernel on the prefix + jnp tail.
    shape3 = (4, 537)          # 2148 elements: 2 full rows + 100-element tail
    pred3 = jax.random.normal(ks[4], shape3, dtype=jnp.float32)
    targ3 = (jax.random.uniform(ks[5], shape3) > 0.5).astype(jnp.float32)
    loss3 = jax.block_until_ready(bce_with_logits_loss(pred3, targ3))
    ref3 = _reference(pred3, targ3)
    assert jnp.allclose(loss3, ref3, rtol=1e-5, atol=1e-6), (loss3, ref3)

    # Test 4: bf16 inputs read in native dtype, cast in-kernel.
    pred4 = (jax.random.normal(ks[6], shape, dtype=jnp.float32) * 2.0).astype(jnp.bfloat16)
    targ4 = (jax.random.uniform(ks[7], shape) > 0.5).astype(jnp.bfloat16)
    loss4 = jax.block_until_ready(bce_with_logits_loss(pred4, targ4))
    ref4 = _reference(pred4, targ4)
    assert jnp.allclose(loss4, ref4, rtol=1e-4, atol=1e-5), (loss4, ref4)

    print("KERNEL_OK")
</pallas_src>

<mosaic_0001>
module attributes {stable_mosaic.version = 11 : i64} {
  func.func @_bce_kernel(%arg0: i32, %arg1: i32, %arg2: memref<2x1024xf32, #tpu.memory_space<vmem>>, %arg3: memref<2x1024xf32, #tpu.memory_space<vmem>>, %arg4: memref<1x1xf32, #tpu.memory_space<smem>>, %arg5: memref<2x1024xf32, #tpu.memory_space<vmem>>) attributes {dimension_semantics = [#tpu.dimension_semantics<arbitrary>, #tpu.dimension_semantics<arbitrary>], iteration_bounds = array<i64: 1, 1>, scalar_prefetch = 0 : i64, scratch_operands = 1 : i64, tpu.core_type = #tpu.core_type<tc>, window_params = [{transform_indices = @transform_0, window_bounds = array<i64: 2, 1024>}, {transform_indices = @transform_1, window_bounds = array<i64: 2, 1024>}, {transform_indices = @transform_2, window_bounds = array<i64: 1, 1>}]} {
    %c0_i32 = arith.constant 0 : i32
    %0 = arith.cmpi eq, %arg1, %c0_i32 : i32
    %1 = arith.extui %0 : i1 to i32
    %c0_i32_0 = arith.constant 0 : i32
    %2 = arith.cmpi ne, %1, %c0_i32_0 : i32
    scf.if %2 {
      %cst_11 = arith.constant 0.000000e+00 : f32
      %21 = vector.broadcast %cst_11 : f32 to vector<2x1024xf32>
      %c0_12 = arith.constant 0 : index
      %c0_13 = arith.constant 0 : index
      %22 = vector.load %arg5[%c0_12, %c0_13] : memref<2x1024xf32, #tpu.memory_space<vmem>>, vector<2x1024xf32>
      tpu.vector_store %arg5[%c0_12, %c0_13], %21 {strides = array<i32>} : memref<2x1024xf32, #tpu.memory_space<vmem>>, vector<2x1024xf32>,
    } else {
    }
    %c0 = arith.constant 0 : index
    %c0_1 = arith.constant 0 : index
    %3 = vector.load %arg2[%c0, %c0_1] : memref<2x1024xf32, #tpu.memory_space<vmem>>, vector<2x1024xf32>
    %c0_2 = arith.constant 0 : index
    %c0_3 = arith.constant 0 : index
    %4 = vector.load %arg3[%c0_2, %c0_3] : memref<2x1024xf32, #tpu.memory_space<vmem>>, vector<2x1024xf32>
    %cst = arith.constant 0.000000e+00 : f32
    %5 = vector.broadcast %cst : f32 to vector<2x1024xf32>
    %6 = arith.maximumf %3, %5 : vector<2x1024xf32>
    %7 = arith.mulf %3, %4 : vector<2x1024xf32>
    %8 = arith.subf %6, %7 : vector<2x1024xf32>
    %9 = math.absf %3 : vector<2x1024xf32>
    %cst_4 = arith.constant 0.000000e+00 : f32
    %10 = vector.broadcast %cst_4 : f32 to vector<2x1024xf32>
    %11 = arith.subf %10, %9 : vector<2x1024xf32>
    %12 = math.exp %11 : vector<2x1024xf32>
    %13 = math.log1p %12 : vector<2x1024xf32>
    %14 = arith.addf %8, %13 : vector<2x1024xf32>
    %c0_5 = arith.constant 0 : index
    %c0_6 = arith.constant 0 : index
    %15 = vector.load %arg5[%c0_5, %c0_6] : memref<2x1024xf32, #tpu.memory_space<vmem>>, vector<2x1024xf32>
    %16 = arith.addf %15, %14 : vector<2x1024xf32>
    %c0_7 = arith.constant 0 : index
    %c0_8 = arith.constant 0 : index
    %17 = vector.load %arg5[%c0_7, %c0_8] : memref<2x1024xf32, #tpu.memory_space<vmem>>, vector<2x1024xf32>
    tpu.vector_store %arg5[%c0_7, %c0_8], %16 {strides = array<i32>} : memref<2x1024xf32, #tpu.memory_space<vmem>>, vector<2x1024xf32>,
    %c0_i32_9 = arith.constant 0 : i32
    %18 = arith.cmpi eq, %arg1, %c0_i32_9 : i32
    %19 = arith.extui %18 : i1 to i32
    %c0_i32_10 = arith.constant 0 : i32
    %20 = arith.cmpi ne, %19, %c0_i32_10 : i32
    scf.if %20 {
      %c0_11 = arith.constant 0 : index
      %c0_12 = arith.constant 0 : index
      %21 = vector.load %arg5[%c0_11, %c0_12] : memref<2x1024xf32, #tpu.memory_space<vmem>>, vector<2x1024xf32>
      %22 = vector.shape_cast %21 : vector<2x1024xf32> to vector<1x2x1024xf32>
      %cst_13 = arith.constant dense<0.000000e+00> : vector<1xf32>
      %23 = vector.multi_reduction <add>, %22, %cst_13 [1, 2] : vector<1x2x1024xf32> to vector<1xf32>
      %24 = vector.shape_cast %23 : vector<1xf32> to vector<1x1x1xf32>
      %25 = vector.extract %24[0, 0, 0] : f32 from vector<1x1x1xf32>
      %c0_14 = arith.constant 0 : index
      %c0_15 = arith.constant 0 : index
      %26 = memref.load %arg4[%c0_14, %c0_15] : memref<1x1xf32, #tpu.memory_space<smem>>
      memref.store %25, %arg4[%c0_14, %c0_15] : memref<1x1xf32, #tpu.memory_space<smem>>
    } else {
    }
    return
  }
  func.func @transform_0(%arg0: i32, %arg1: i32) -> (i32, i32) {
    %c1_i32 = arith.constant 1 : i32
    %0 = arith.muli %arg0, %c1_i32 : i32
    %1 = arith.addi %0, %arg1 : i32
    %c0_i32 = arith.constant 0 : i32
    %c0_i32_0 = arith.constant 0 : i32
    return %1, %c0_i32 : i32, i32
  }
  func.func @transform_1(%arg0: i32, %arg1: i32) -> (i32, i32) {
    %c1_i32 = arith.constant 1 : i32
    %0 = arith.muli %arg0, %c1_i32 : i32
    %1 = arith.addi %0, %arg1 : i32
    %c0_i32 = arith.constant 0 : i32
    %c0_i32_0 = arith.constant 0 : i32
    return %1, %c0_i32 : i32, i32
  }
  func.func @transform_2(%arg0: i32, %arg1: i32) -> (i32, i32) {
    %c0_i32 = arith.constant 0 : i32
    %c0_i32_0 = arith.constant 0 : i32
    return %arg0, %c0_i32 : i32, i32
  }
}

</mosaic_0001>

<bundles_post_ra>
// kernel: tpu_custom_call.1
= control target key start
LH: loop header
LB: loop body
LE: loop exit
PB: predicated region body
PF: predicated region fallthrough
CT: control target
= control target key end

     0   :  { %7 = vsyncpa [#allocation4], 0  ;;  %s291_s0 = inlined_call_operand.hbm [shape: f32[2,1024], index: 0, kind: input, shape index: {}]   ;;  %s292_s1 = inlined_call_operand.hbm [shape: f32[2,1024], index: 1, kind: input, shape index: {}]   ;;  %s293_s2 = inlined_call_operand.hbm [shape: f32[1,1], index: 2, kind: output, shape index: {}]  }
   0x1   :  { %8 = vsyncpa [#allocation7], 0 }
   0x2   :  { %9 = vsyncpa [#allocation5], 0  ;;  %s255_s9 = smov [#allocation3]   ;;  %s256_s11 = smov [#allocation6]  }
   0x3   :  { %s20_s10 = sshll.u32 %s255_s9, 4  ;;  %s34_s12 = sshll.u32 %s256_s11, 4  ;;  %s21_s10 = int_to_ptr.vmem [resolvable:$true] %s20_s10  ;;  %s35_s12 = int_to_ptr.vmem [resolvable:$true] %s34_s12 }
   0x4   :  { %s209_s13 = scalar_lea.vmem %s21_s10, 256  ;;  %p214_p1 = scmp.lt.s32.totalorder %s21_s10, %s21_s10 }
   0x5   :  { %p210_p0 = scmp.ne.s32.totalorder %s21_s10, %s209_s13  ;;  %p215_p2 = scmp.lt.s32.totalorder %s209_s13, %s209_s13 }
   0x7   :  { %p216_p3 = por %p215_p2, %p214_p1 }
   0x9   :  { %p217_p4 = pnand %p216_p3, %p210_p0 }
   0xb   :  { %220 = shalt.err (!%p217_p4)
}
   0xc   :  { %23 = dma.hbm_to_vmem [thread:$0]  %s291_s0, 256, %s21_s10, [#allocation4]  }
   0xd   :  { %s229_s16 = scalar_lea.vmem %s35_s12, 256  ;;  %p234_p6 = scmp.lt.s32.totalorder %s35_s12, %s35_s12 }
   0xe   :  { %p230_p5 = scmp.ne.s32.totalorder %s35_s12, %s229_s16  ;;  %p235_p7 = scmp.lt.s32.totalorder %s229_s16, %s229_s16 }
  0x10   :  { %p236_p8 = por %p235_p7, %p234_p6 }
  0x12   :  { %p237_p9 = pnand %p236_p8, %p230_p5 }
  0x14   :  { %240 = shalt.err (!%p237_p9)
}
  0x15   :  { %37 = dma.hbm_to_vmem [thread:$0]  %s292_s1, 256, %s35_s12, [#allocation7]  }
  0x16   :  { %249 = dma.done.wait [#allocation4], 256  }
  0x17   :  { %250 = vsyncadd [#allocation4], 4294967040 }
  0x18   :  { %251 = dma.done.wait [#allocation7], 256  }
  0x19   :  { %252 = vsyncadd [#allocation7], 4294967040  ;;  %v52_v0 = vld [vmem:[#allocation3] sm:$0xff]  ;;  %v53_v1 = vld [vmem:[#allocation3 + $0x8] sm:$0xff]  ;;  %v257_v16 = vmov 1983009808   ;;  %v107_v18 = vlaneseq }
  0x1a   :  { %v62_v2 = vand.u32 2147483647, %v52_v0  ;;  %v63_v3 = vand.u32 2147483647, %v53_v1  ;;  %v54_v14 = vld [vmem:[#allocation6] sm:$0xff]  ;;  %v55_v15 = vld [vmem:[#allocation6 + $0x8] sm:$0xff]  ;;  %v105_v17 = vunpack.c.l.s4 %v257_v16 }
  0x1b   :  { %v56_v20 = vmax.f32 %v52_v0, 0.0  ;;  %v58_v21 = vmul.f32 %v54_v14, %v52_v0  ;;  %v57_v24 = vmax.f32 %v53_v1, 0.0  ;;  %v59_v25 = vmul.f32 %v55_v15, %v53_v1  ;;  %s258_s1 = smov [#allocation8]  }
  0x1c   :  { %v64_v4 = vsub.f32 0.0, %v62_v2  ;;  %v65_v5 = vsub.f32 0.0, %v63_v3  ;;  %v106_v27 = vunpack.c.0.s8 %v105_v17  ;;  %v108_v28 = vshrl.u32 %v107_v18, 7 }
  0x1d   :  { %v60_v31 = vsub.f32 %v56_v20, %v58_v21  ;;  %v61_v34 = vsub.f32 %v57_v24, %v59_v25  ;;  %vm145_vm2 = vcmask 1041408  }
  0x1e   :  { %v66_v6 = vmul.f32 1.442695, %v64_v4  ;;  %v68_v7 = vmul.f32 1.442695, %v65_v5  ;;  %v109_v37 = vsub.s32 %v106_v27, %v108_v28 }
  0x20   :  { %193 = vpow2.f32 %v66_v6 }
  0x21   :  { %195 = vpow2.f32 %v68_v7 }
  0x2d   :  { %v194_v8 = vpop.eup %193 }
  0x2e   :  { %v196_v9 = vpop.eup %195  ;;  %v70_v10 = vadd.f32 1.0, %v194_v8  ;;  %v73_v12 = vmul.f32 -0.5, %v194_v8  ;;  %v76_v22 = vand.u32 2147483647, %v194_v8 }
  0x2f   :  { %v79_v11 = vadd.f32 1.0, %v196_v9  ;;  %v82_v13 = vmul.f32 -0.5, %v196_v9  ;;  %v85_v26 = vand.u32 2147483647, %v196_v9 }
  0x30   :  { %197 = vlog2.f32 %v70_v10  ;;  %v74_v19 = vadd.f32 1.0, %v73_v12  ;;  %vm77_vm0 = vcmp.lt.f32.partialorder %v76_v22, 0.0004427343 }
  0x31   :  { %199 = vlog2.f32 %v79_v11  ;;  %v83_v23 = vadd.f32 1.0, %v82_v13  ;;  %vm86_vm1 = vcmp.lt.f32.partialorder %v85_v26, 0.0004427343 }
  0x32   :  { %v75_v29 = vmul.f32 %v194_v8, %v74_v19 }
  0x33   :  { %v84_v32 = vmul.f32 %v196_v9, %v83_v23 }
  0x3d   :  { %v198_v30 = vpop.eup %197 }
  0x3e   :  { %v200_v33 = vpop.eup %199  ;;  %v72_v35 = vmul.f32 0.6931472, %v198_v30 }
  0x3f   :  { %v81_v36 = vmul.f32 0.6931472, %v200_v33 }
  0x40   :  { %v78_v38 = vsel %vm77_vm0, %v75_v29, %v72_v35 }
  0x41   :  { %v87_v39 = vsel %vm86_vm1, %v84_v32, %v81_v36  ;;  %v88_v40 = vadd.f32 %v78_v38, %v60_v31 }
  0x42   :  { %v89_v41 = vadd.f32 %v87_v39, %v61_v34 }
  0x43   :  { %v103_v42 = vcombine.high %v88_v40, %v88_v40  ;;  %v110_v43 = vrot.slane %v88_v40, %v109_v37 }
  0x44   :  { %v120_v44 = vcombine.high %v89_v41, %v89_v41  ;;  %v127_v47 = vrot.slane %v89_v41, %v109_v37 }
  0x45   :  { %v117_v45 = vrot.slane %v103_v42, %v109_v37  ;;  %v118_v46 = vcombine.high %v110_v43, %v110_v43  ;;  %v146_v48 = vsel %vm145_vm2, %v110_v43, 0.0 }
  0x46   :  { %v134_v53 = vrot.slane %v120_v44, %v109_v37  ;;  %v135_v54 = vcombine.high %v127_v47, %v127_v47  ;;  %v153_v57 = vsel %vm145_vm2, %v127_v47, 0.0 }
  0x47   :  { %v119_v49 = vcombine.high %v117_v45, %v117_v45  ;;  %v147_v50 = vsel %vm145_vm2, %v118_v46, 0.0  ;;  %v149_v51 = vsel %vm145_vm2, %v117_v45, 0.0 }
  0x48   :  { %v148_v52 = vadd.f32 %v147_v50, %v146_v48  ;;  %v136_v59 = vcombine.high %v134_v53, %v134_v53  ;;  %v155_v60 = vsel %vm145_vm2, %v135_v54, 0.0  ;;  %v157_v62 = vsel %vm145_vm2, %v134_v53, 0.0 }
  0x49   :  { %v151_v55 = vsel %vm145_vm2, %v119_v49, 0.0 }
  0x4a   :  { %v150_v56 = vadd.f32 %v149_v51, %v148_v52  ;;  %v159_v0 = vsel %vm145_vm2, %v136_v59, 0.0 }
  0x4c   :  { %v152_v58 = vadd.f32 %v151_v55, %v150_v56 }
  0x4e   :  { %v154_v61 = vadd.f32 %v153_v57, %v152_v58 }
  0x50   :  { %v156_v63 = vadd.f32 %v155_v60, %v154_v61 }
  0x52   :  { %v158_v1 = vadd.f32 %v157_v62, %v156_v63 }
  0x54   :  { %v160_v2 = vadd.f32 %v159_v0, %v158_v1 }
  0x56   :  { %161 = vadd.xlane.f32.xlu0 %v160_v2 }
  0xdf   :  { %v162_v3 = vpop.xlane.xlu0 %161 }
  0xe0   :  { %v163_v4 = vrot.slane %v162_v3, 4 }
  0xe2   :  { %v164_v5 = vadd.f32 %v163_v4, %v162_v3 }
  0xe4   :  { %v165_v6 = vrot.slane %v164_v5, 2 }
  0xe6   :  { %v166_v7 = vadd.f32 %v165_v6, %v164_v5 }
  0xe8   :  { %v167_v8 = vrot.slane %v166_v7, 1 }
  0xea   :  { %v168_v9 = vadd.f32 %v167_v8, %v166_v7 }
  0xec   :  { %187 = vpush %v168_v9 }
 0x11d   :  { %s188_s0 = spop %187 }
 0x11e   :  { %171 = sst [smem:[#allocation8]] %s188_s0 }
 0x11f   :  { %179 = dma.smem_to_hbm %s258_s1, 16, %s293_s2, [#allocation5]  }
 0x120   :  { %253 = dma.done.wait [#allocation5], 16  }
 0x121   :  { %254 = vsyncadd [#allocation5], 4294967280 }
 0x122   :  { %183 = sfence }
 0x123   :  { %184 = vsyncpa [#allocation4], 1 }
 0x124   :  { %185 = vsyncpa [#allocation7], 1 }
 0x125   :  { %186 = vsyncpa [#allocation5], 1 }

</bundles_post_ra>
